<compile_context>
chip_gen: v7x
topology: tpu7x:2x2x1
jax: 0.10.0
libtpu: 0.0.40
codegen_flags: <defaults>
</compile_context>

<pallas_src>
import functools

import jax
import jax.numpy as jnp
from jax.experimental import pallas as pl
from jax.experimental.pallas import tpu as pltpu


def _se_kernel(x_ref, w1s_ref, w2s_ref, w1a_ref, w2a_ref, o_ref, *, inv_hw):
    f32 = jnp.float32
    # (Bblk, C, HWp).  For f32 inputs the astype is a no-op; for narrower
    # inputs the means / MLPs still accumulate in f32.
    xf = x_ref[...].astype(f32)

    # ---- squeeze: spatial mean (zero padding lanes contribute nothing) ----
    m0 = jnp.sum(xf, axis=-1) * inv_hw                                    # (Bb, C)

    # ---- sparsity MLP: h = relu(m @ W1s.T), t = sigmoid(h @ W2s.T) ----
    w1s = w1s_ref[...].astype(f32)                                        # (Cr, C)
    w2s = w2s_ref[...].astype(f32)                                        # (C, Cr)
    h0 = jnp.maximum(jnp.sum(w1s[None] * m0[:, None, :], axis=-1), 0.0)   # (Bb, Cr)
    t = jax.nn.sigmoid(jnp.sum(w2s[None] * h0[:, None, :], axis=-1))      # (Bb, C)

    # ---- sparsify: strict x > t (matches `(x > threshold).float()`) ----
    xs = jnp.where(xf > t[:, :, None], xf, 0.0)                           # (Bb, C, HWp)

    # ---- attention MLP on the sparsified activations ----
    m1 = jnp.sum(xs, axis=-1) * inv_hw                                    # (Bb, C)
    w1a = w1a_ref[...].astype(f32)
    w2a = w2a_ref[...].astype(f32)
    h1 = jnp.maximum(jnp.sum(w1a[None] * m1[:, None, :], axis=-1), 0.0)   # (Bb, Cr)
    y = jax.nn.sigmoid(jnp.sum(w2a[None] * h1[:, None, :], axis=-1))      # (Bb, C)

    # ---- scale & store (lane-dense: HWp is a multiple of 128) ----
    o_ref[...] = (xs * y[:, :, None]).astype(o_ref.dtype)


@jax.jit
def se_attention(x, w1s, w2s, w1a, w2a):
    """x: (B, C, H, W).  Weights in PyTorch Linear (out, in) layout:
    w1s/w1a: (C//r, C), w2s/w2a: (C, C//r)."""
    b, c, h, w = x.shape
    hw = h * w
    hwp = ((hw + 127) // 128) * 128            # lane-dense last dim
    dsize = jnp.dtype(x.dtype).itemsize

    xr = x.reshape(b, c, hw)
    if hwp != hw:
        # Zero padding is mean/mask-safe: pads contribute 0 to the sums and stay
        # 0 after (x > t) since t = sigmoid(...) > 0.
        xr = jnp.pad(xr, ((0, 0), (0, 0), (0, hwp - hw)))

    # Batch block targeting ~2 MB per input block (largest divisor of B), which
    # keeps double-buffered in+out plus the f32 intermediates well inside the
    # scoped-VMEM budget on v5e/v6e/v7x.
    per_batch = c * hwp * dsize
    target_bytes = 2 * 1024 * 1024
    bblk = max(1, min(b, target_bytes // max(per_batch, 1)))
    while b % bblk:
        bblk -= 1
    grid = (b // bblk,)

    block_bytes = bblk * per_batch
    vmem_limit = int(min(48 * 1024 * 1024,
                         max(32 * 1024 * 1024, 6 * block_bytes)))

    cr = w1s.shape[0]
    cost = pl.CostEstimate(
        flops=4 * b * c * hw + 8 * b * c * cr,
        transcendentals=2 * b * c,
        bytes_accessed=2 * b * c * hwp * dsize + 4 * c * cr * 4,
    )

    kernel = functools.partial(_se_kernel, inv_hw=1.0 / float(hw))

    out = pl.pallas_call(
        kernel,
        out_shape=jax.ShapeDtypeStruct((b, c, hwp), x.dtype),
        grid_spec=pltpu.PrefetchScalarGridSpec(
            num_scalar_prefetch=0,
            grid=grid,
            in_specs=[
                pl.BlockSpec((bblk, c, hwp), lambda i: (i, 0, 0)),
                pl.BlockSpec(w1s.shape, lambda i: (0, 0)),
                pl.BlockSpec(w2s.shape, lambda i: (0, 0)),
                pl.BlockSpec(w1a.shape, lambda i: (0, 0)),
                pl.BlockSpec(w2a.shape, lambda i: (0, 0)),
            ],
            out_specs=pl.BlockSpec((bblk, c, hwp), lambda i: (i, 0, 0)),
        ),
        compiler_params=pltpu.CompilerParams(
            dimension_semantics=("parallel",),
            vmem_limit_bytes=vmem_limit),
        cost_estimate=cost,
    )(xr, w1s, w2s, w1a, w2a)

    if hwp != hw:
        out = out[:, :, :hw]
    return out.reshape(b, c, h, w)


def se_attention_ref(x, w1s, w2s, w1a, w2a):
    """Pure-JAX reference mirroring the PyTorch forward."""
    m0 = jnp.mean(x, axis=(2, 3))                                    # (B, C)
    t = jax.nn.sigmoid(jnp.maximum(m0 @ w1s.T, 0.0) @ w2s.T)         # (B, C)
    t = t[:, :, None, None]
    xs = x * (x > t).astype(x.dtype)
    m1 = jnp.mean(xs, axis=(2, 3))
    y = jax.nn.sigmoid(jnp.maximum(m1 @ w1a.T, 0.0) @ w2a.T)
    return xs * y[:, :, None, None]


def _make_inputs(key, b, c, h, w, reduction):
    cr = max(1, c // reduction)
    kx, k1, k2, k3, k4 = jax.random.split(key, 5)
    x = jax.random.normal(kx, (b, c, h, w), dtype=jnp.float32)
    # nn.Linear weights, init.normal_(std=0.001), bias=False; (out, in) layout.
    w1s = 0.001 * jax.random.normal(k1, (cr, c), dtype=jnp.float32)
    w2s = 0.001 * jax.random.normal(k2, (c, cr), dtype=jnp.float32)
    w1a = 0.001 * jax.random.normal(k3, (cr, c), dtype=jnp.float32)
    w2a = 0.001 * jax.random.normal(k4, (c, cr), dtype=jnp.float32)
    return x, w1s, w2s, w1a, w2a


if __name__ == "__main__":
    key = jax.random.PRNGKey(0)
    k_a, k_b = jax.random.split(key, 2)

    # Case 1: HW already a multiple of 128 (lane-dense path, multi-batch block).
    x, w1s, w2s, w1a, w2a = _make_inputs(k_a, b=2, c=64, h=16, w=16, reduction=16)
    out = jax.block_until_ready(se_attention(x, w1s, w2s, w1a, w2a))
    ref = se_attention_ref(x, w1s, w2s, w1a, w2a)
    assert out.shape == x.shape
    assert jnp.allclose(out, ref, atol=1e-5, rtol=1e-5), "mismatch (case 1)"

    # Case 2: ragged HW (exercises zero-padding to the next multiple of 128).
    x, w1s, w2s, w1a, w2a = _make_inputs(k_b, b=3, c=32, h=7, w=9, reduction=16)
    out = jax.block_until_ready(se_attention(x, w1s, w2s, w1a, w2a))
    ref = se_attention_ref(x, w1s, w2s, w1a, w2a)
    assert out.shape == x.shape
    assert jnp.allclose(out, ref, atol=1e-5, rtol=1e-5), "mismatch (case 2)"

    print("KERNEL_OK")
</pallas_src>

<mosaic_0001>
module attributes {stable_mosaic.version = 11 : i64} {
  func.func @_se_kernel(%arg0: i32, %arg1: memref<2x64x256xf32, #tpu.memory_space<vmem>>, %arg2: memref<4x64xf32, #tpu.memory_space<vmem>>, %arg3: memref<64x4xf32, #tpu.memory_space<vmem>>, %arg4: memref<4x64xf32, #tpu.memory_space<vmem>>, %arg5: memref<64x4xf32, #tpu.memory_space<vmem>>, %arg6: memref<2x64x256xf32, #tpu.memory_space<vmem>>) attributes {dimension_semantics = [#tpu.dimension_semantics<parallel>], iteration_bounds = array<i64: 1>, scalar_prefetch = 0 : i64, scratch_operands = 0 : i64, tpu.core_type = #tpu.core_type<tc>, window_params = [{transform_indices = @transform_0, window_bounds = array<i64: 2, 64, 256>}, {pipeline_mode = #tpu.pipeline_mode<synchronous>, transform_indices = @transform_1, window_bounds = array<i64: 4, 64>}, {pipeline_mode = #tpu.pipeline_mode<synchronous>, transform_indices = @transform_2, window_bounds = array<i64: 64, 4>}, {pipeline_mode = #tpu.pipeline_mode<synchronous>, transform_indices = @transform_3, window_bounds = array<i64: 4, 64>}, {pipeline_mode = #tpu.pipeline_mode<synchronous>, transform_indices = @transform_4, window_bounds = array<i64: 64, 4>}, {transform_indices = @transform_5, window_bounds = array<i64: 2, 64, 256>}]} {
    %c0 = arith.constant 0 : index
    %c0_0 = arith.constant 0 : index
    %c0_1 = arith.constant 0 : index
    %0 = vector.load %arg1[%c0, %c0_0, %c0_1] : memref<2x64x256xf32, #tpu.memory_space<vmem>>, vector<2x64x256xf32>
    %cst = arith.constant dense<0.000000e+00> : vector<2x64xf32>
    %1 = vector.multi_reduction <add>, %0, %cst [2] : vector<2x64x256xf32> to vector<2x64xf32>
    %cst_2 = arith.constant 3.906250e-03 : f32
    %2 = vector.broadcast %cst_2 : f32 to vector<2x64xf32>
    %3 = arith.mulf %1, %2 : vector<2x64xf32>
    %c0_3 = arith.constant 0 : index
    %c0_4 = arith.constant 0 : index
    %4 = vector.load %arg2[%c0_3, %c0_4] : memref<4x64xf32, #tpu.memory_space<vmem>>, vector<4x64xf32>
    %c0_5 = arith.constant 0 : index
    %c0_6 = arith.constant 0 : index
    %5 = vector.load %arg3[%c0_5, %c0_6] : memref<64x4xf32, #tpu.memory_space<vmem>>, vector<64x4xf32>
    %6 = vector.shape_cast %4 : vector<4x64xf32> to vector<1x4x64xf32>
    %7 = vector.shape_cast %3 : vector<2x64xf32> to vector<2x1x64xf32>
    %8 = vector.broadcast %6 : vector<1x4x64xf32> to vector<2x4x64xf32>
    %9 = vector.broadcast %7 : vector<2x1x64xf32> to vector<2x4x64xf32>
    %10 = arith.mulf %8, %9 : vector<2x4x64xf32>
    %cst_7 = arith.constant dense<0.000000e+00> : vector<2x4xf32>
    %11 = vector.multi_reduction <add>, %10, %cst_7 [2] : vector<2x4x64xf32> to vector<2x4xf32>
    %cst_8 = arith.constant 0.000000e+00 : f32
    %12 = vector.broadcast %cst_8 : f32 to vector<2x4xf32>
    %13 = arith.maximumf %11, %12 : vector<2x4xf32>
    %14 = vector.shape_cast %5 : vector<64x4xf32> to vector<1x64x4xf32>
    %15 = vector.shape_cast %13 : vector<2x4xf32> to vector<2x1x4xf32>
    %16 = vector.broadcast %14 : vector<1x64x4xf32> to vector<2x64x4xf32>
    %17 = vector.broadcast %15 : vector<2x1x4xf32> to vector<2x64x4xf32>
    %18 = arith.mulf %16, %17 : vector<2x64x4xf32>
    %cst_9 = arith.constant dense<0.000000e+00> : vector<2x64xf32>
    %19 = vector.multi_reduction <add>, %18, %cst_9 [2] : vector<2x64x4xf32> to vector<2x64xf32>
    %20 = arith.negf %19 : vector<2x64xf32>
    %21 = math.exp %20 : vector<2x64xf32>
    %cst_10 = arith.constant 1.000000e+00 : f32
    %22 = vector.broadcast %cst_10 : f32 to vector<2x64xf32>
    %23 = arith.addf %22, %21 : vector<2x64xf32>
    %24 = arith.divf %22, %23 : vector<2x64xf32>
    %25 = vector.shape_cast %24 : vector<2x64xf32> to vector<2x64x1xf32>
    %26 = vector.broadcast %25 : vector<2x64x1xf32> to vector<2x64x256xf32>
    %27 = arith.cmpf ogt, %0, %26 : vector<2x64x256xf32>
    %cst_11 = arith.constant 0.000000e+00 : f32
    %28 = vector.broadcast %cst_11 : f32 to vector<2x64x256xf32>
    %29 = arith.select %27, %0, %28 : vector<2x64x256xi1>, vector<2x64x256xf32>
    %cst_12 = arith.constant dense<0.000000e+00> : vector<2x64xf32>
    %30 = vector.multi_reduction <add>, %29, %cst_12 [2] : vector<2x64x256xf32> to vector<2x64xf32>
    %cst_13 = arith.constant 3.906250e-03 : f32
    %31 = vector.broadcast %cst_13 : f32 to vector<2x64xf32>
    %32 = arith.mulf %30, %31 : vector<2x64xf32>
    %c0_14 = arith.constant 0 : index
    %c0_15 = arith.constant 0 : index
    %33 = vector.load %arg4[%c0_14, %c0_15] : memref<4x64xf32, #tpu.memory_space<vmem>>, vector<4x64xf32>
    %c0_16 = arith.constant 0 : index
    %c0_17 = arith.constant 0 : index
    %34 = vector.load %arg5[%c0_16, %c0_17] : memref<64x4xf32, #tpu.memory_space<vmem>>, vector<64x4xf32>
    %35 = vector.shape_cast %33 : vector<4x64xf32> to vector<1x4x64xf32>
    %36 = vector.shape_cast %32 : vector<2x64xf32> to vector<2x1x64xf32>
    %37 = vector.broadcast %35 : vector<1x4x64xf32> to vector<2x4x64xf32>
    %38 = vector.broadcast %36 : vector<2x1x64xf32> to vector<2x4x64xf32>
    %39 = arith.mulf %37, %38 : vector<2x4x64xf32>
    %cst_18 = arith.constant dense<0.000000e+00> : vector<2x4xf32>
    %40 = vector.multi_reduction <add>, %39, %cst_18 [2] : vector<2x4x64xf32> to vector<2x4xf32>
    %cst_19 = arith.constant 0.000000e+00 : f32
    %41 = vector.broadcast %cst_19 : f32 to vector<2x4xf32>
    %42 = arith.maximumf %40, %41 : vector<2x4xf32>
    %43 = vector.shape_cast %34 : vector<64x4xf32> to vector<1x64x4xf32>
    %44 = vector.shape_cast %42 : vector<2x4xf32> to vector<2x1x4xf32>
    %45 = vector.broadcast %43 : vector<1x64x4xf32> to vector<2x64x4xf32>
    %46 = vector.broadcast %44 : vector<2x1x4xf32> to vector<2x64x4xf32>
    %47 = arith.mulf %45, %46 : vector<2x64x4xf32>
    %cst_20 = arith.constant dense<0.000000e+00> : vector<2x64xf32>
    %48 = vector.multi_reduction <add>, %47, %cst_20 [2] : vector<2x64x4xf32> to vector<2x64xf32>
    %49 = arith.negf %48 : vector<2x64xf32>
    %50 = math.exp %49 : vector<2x64xf32>
    %cst_21 = arith.constant 1.000000e+00 : f32
    %51 = vector.broadcast %cst_21 : f32 to vector<2x64xf32>
    %52 = arith.addf %51, %50 : vector<2x64xf32>
    %53 = arith.divf %51, %52 : vector<2x64xf32>
    %54 = vector.shape_cast %53 : vector<2x64xf32> to vector<2x64x1xf32>
    %55 = vector.broadcast %54 : vector<2x64x1xf32> to vector<2x64x256xf32>
    %56 = arith.mulf %29, %55 : vector<2x64x256xf32>
    %c0_22 = arith.constant 0 : index
    %c0_23 = arith.constant 0 : index
    %c0_24 = arith.constant 0 : index
    %57 = vector.load %arg6[%c0_22, %c0_23, %c0_24] : memref<2x64x256xf32, #tpu.memory_space<vmem>>, vector<2x64x256xf32>
    tpu.vector_store %arg6[%c0_22, %c0_23, %c0_24], %56 {strides = array<i32>} : memref<2x64x256xf32, #tpu.memory_space<vmem>>, vector<2x64x256xf32>,
    return
  }
  func.func @transform_0(%arg0: i32) -> (i32, i32, i32) {
    %c0_i32 = arith.constant 0 : i32
    %c0_i32_0 = arith.constant 0 : i32
    %c0_i32_1 = arith.constant 0 : i32
    return %arg0, %c0_i32, %c0_i32_0 : i32, i32, i32
  }
  func.func @transform_1(%arg0: i32) -> (i32, i32) {
    %c0_i32 = arith.constant 0 : i32
    %c0_i32_0 = arith.constant 0 : i32
    %c0_i32_1 = arith.constant 0 : i32
    return %c0_i32, %c0_i32_0 : i32, i32
  }
  func.func @transform_2(%arg0: i32) -> (i32, i32) {
    %c0_i32 = arith.constant 0 : i32
    %c0_i32_0 = arith.constant 0 : i32
    %c0_i32_1 = arith.constant 0 : i32
    return %c0_i32, %c0_i32_0 : i32, i32
  }
  func.func @transform_3(%arg0: i32) -> (i32, i32) {
    %c0_i32 = arith.constant 0 : i32
    %c0_i32_0 = arith.constant 0 : i32
    %c0_i32_1 = arith.constant 0 : i32
    return %c0_i32, %c0_i32_0 : i32, i32
  }
  func.func @transform_4(%arg0: i32) -> (i32, i32) {
    %c0_i32 = arith.constant 0 : i32
    %c0_i32_0 = arith.constant 0 : i32
    %c0_i32_1 = arith.constant 0 : i32
    return %c0_i32, %c0_i32_0 : i32, i32
  }
  func.func @transform_5(%arg0: i32) -> (i32, i32, i32) {
    %c0_i32 = arith.constant 0 : i32
    %c0_i32_0 = arith.constant 0 : i32
    %c0_i32_1 = arith.constant 0 : i32
    return %arg0, %c0_i32, %c0_i32_0 : i32, i32, i32
  }
}

</mosaic_0001>

<bundles_post_ra>
// kernel: se_attention.1
= control target key start
LH: loop header
LB: loop body
LE: loop exit
PB: predicated region body
PF: predicated region fallthrough
CT: control target
= control target key end

     0   :  { %v141_v52 = vlaneseq  ;;  %vm152_vm0 = vcmask 130112   ;;  %vm159_vm1 = vcmask 195712   ;;  %vm166_vm2 = vcmask 261312   ;;  %s1782_s0 = inlined_call_operand.vmem [shape: f32[2,64,256], index: 0, kind: input, shape index: {}]   ;;  %s1783_s1 = inlined_call_operand.vmem [shape: f32[4,64], index: 1, kind: input, shape index: {}]   ;;  %s1784_s2 = inlined_call_operand.vmem [shape: f32[64,4], index: 2, kind: input, shape index: {}]   ;;  %s1785_s3 = inlined_call_operand.vmem [shape: f32[4,64], index: 3, kind: input, shape index: {}]   ;;  %s1786_s4 = inlined_call_operand.vmem [shape: f32[64,4], index: 4, kind: input, shape index: {}]   ;;  %s1787_s5 = inlined_call_operand.vmem [shape: f32[2,64,256], index: 5, kind: output, shape index: {}]  }
   0x1   :  { %v1135_v0 = vld [vmem:[%s1782_s0 + $0x80] sm:$0xff]  ;;  %v1140_v1 = vld [vmem:[%s1782_s0 + $0x88] sm:$0xff]  ;;  %v1157_v5 = vld [vmem:[%s1782_s0 + $0x90] sm:$0xff]  ;;  %vm173_vm3 = vcmask 326912   ;;  %vm180_vm4 = vcmask 392512   ;;  %vm187_vm5 = vcmask 458112  }
   0x2   :  { %v1145_v2 = vld [vmem:[%s1782_s0] sm:$0xff]  ;;  %v76_v3 = vadd.f32 %v1140_v1, %v1135_v0  ;;  %v1152_v4 = vld [vmem:[%s1782_s0 + $0x8] sm:$0xff]  ;;  %v1162_v6 = vld [vmem:[%s1782_s0 + $0x98] sm:$0xff]  ;;  %v142_v55 = vand.u32 127, %v141_v52  ;;  %v144_v57 = vshrl.u32 %v141_v52, 7  ;;  %vm194_vm6 = vcmask 523712  }
   0x3   :  { %v52_v7 = vadd.f32 %v1152_v4, %v1145_v2  ;;  %v1169_v8 = vld [vmem:[%s1782_s0 + $0x10] sm:$0xff]  ;;  %v1174_v9 = vld [vmem:[%s1782_s0 + $0x18] sm:$0xff]  ;;  %v79_v10 = vadd.f32 %v1162_v6, %v1157_v5  ;;  %v1183_v12 = vld [vmem:[%s1782_s0 + $0xa0] sm:$0xff]  ;;  %vm245_vm7 = vcmask 519168   ;;  %vm298_vm8 = vcmask 31744  }
   0x4   :  { %77 = vadd.xlane.f32.xlu1 %v76_v3  ;;  %v55_v11 = vadd.f32 %v1174_v9, %v1169_v8  ;;  %v1188_v13 = vld [vmem:[%s1782_s0 + $0xa8] sm:$0xff]  ;;  %v1193_v14 = vld [vmem:[%s1782_s0 + $0x20] sm:$0xff]  ;;  %v1207_v18 = vld [vmem:[%s1782_s0 + $0xb0] sm:$0xff]  ;;  %v147_v59 = vadd.s32 4294967288, %v142_v55  ;;  %v154_v60 = vadd.s32 4294967280, %v142_v55  ;;  %v161_v61 = vadd.s32 4294967272, %v142_v55 }
   0x5   :  { %53 = vadd.xlane.f32.xlu0 %v52_v7  ;;  %v1198_v15 = vld [vmem:[%s1782_s0 + $0x28] sm:$0xff]  ;;  %v82_v16 = vadd.f32 %v1188_v13, %v1183_v12  ;;  %v1212_v19 = vld [vmem:[%s1782_s0 + $0xb8] sm:$0xff]  ;;  %v1217_v20 = vld [vmem:[%s1782_s0 + $0x30] sm:$0xff]  ;;  %v168_v62 = vadd.s32 4294967264, %v142_v55  ;;  %v1324_v3 = vsub.s32 %v142_v55, %v144_v57 }
   0x6   :  { %v58_v17 = vadd.f32 %v1198_v15, %v1193_v14  ;;  %v1222_v21 = vld [vmem:[%s1782_s0 + $0x38] sm:$0xff]  ;;  %v85_v22 = vadd.f32 %v1212_v19, %v1207_v18  ;;  %v1231_v24 = vld [vmem:[%s1782_s0 + $0xc0] sm:$0xff]  ;;  %v1236_v25 = vld [vmem:[%s1782_s0 + $0xc8] sm:$0xff] }
   0x7   :  { %v61_v23 = vadd.f32 %v1222_v21, %v1217_v20  ;;  %v1241_v26 = vld [vmem:[%s1782_s0 + $0x40] sm:$0xff]  ;;  %v1246_v27 = vld [vmem:[%s1782_s0 + $0x48] sm:$0xff]  ;;  %v88_v28 = vadd.f32 %v1236_v25, %v1231_v24  ;;  %v1255_v30 = vld [vmem:[%s1782_s0 + $0xd0] sm:$0xff] }
   0x8   :  { %80 = vadd.xlane.f32.xlu1 %v79_v10  ;;  %v64_v29 = vadd.f32 %v1246_v27, %v1241_v26  ;;  %v1260_v31 = vld [vmem:[%s1782_s0 + $0xd8] sm:$0xff]  ;;  %v1265_v32 = vld [vmem:[%s1782_s0 + $0x50] sm:$0xff]  ;;  %v1279_v36 = vld [vmem:[%s1782_s0 + $0xe0] sm:$0xff]  ;;  %v175_v10 = vadd.s32 4294967256, %v142_v55 }
   0x9   :  { %56 = vadd.xlane.f32.xlu0 %v55_v11  ;;  %v1270_v33 = vld [vmem:[%s1782_s0 + $0x58] sm:$0xff]  ;;  %v91_v34 = vadd.f32 %v1260_v31, %v1255_v30  ;;  %v1284_v37 = vld [vmem:[%s1782_s0 + $0xe8] sm:$0xff]  ;;  %v1289_v38 = vld [vmem:[%s1782_s0 + $0x60] sm:$0xff]  ;;  %v1326_v11 = vsub.s32 %v147_v59, %v144_v57 }
   0xa   :  { %v67_v35 = vadd.f32 %v1270_v33, %v1265_v32  ;;  %v1294_v39 = vld [vmem:[%s1782_s0 + $0x68] sm:$0xff]  ;;  %v94_v40 = vadd.f32 %v1284_v37, %v1279_v36  ;;  %v1303_v42 = vld [vmem:[%s1782_s0 + $0xf0] sm:$0xff]  ;;  %v1308_v43 = vld [vmem:[%s1782_s0 + $0xf8] sm:$0xff] }
   0xb   :  { %v70_v41 = vadd.f32 %v1294_v39, %v1289_v38  ;;  %1797 = vst [vmem:[#allocation2_spill] sm:$0xff] %v1308_v43  ;;  %v1313_v44 = vld [vmem:[%s1782_s0 + $0x70] sm:$0xff]  ;;  %v1318_v45 = vld [vmem:[%s1782_s0 + $0x78] sm:$0xff]  ;;  %v97_v46 = vadd.f32 %v1308_v43, %v1303_v42 }
   0xc   :  { %83 = vadd.xlane.f32.xlu1 %v82_v16  ;;  %1798 = vst [vmem:[#allocation3_spill] sm:$0xff] %v1313_v44  ;;  %1799 = vst [vmem:[#allocation4_spill] sm:$0xff] %v1318_v45  ;;  %v73_v47 = vadd.f32 %v1318_v45, %v1313_v44  ;;  %v1328_v16 = vsub.s32 %v154_v60, %v144_v57  ;;  %v189_v45 = vadd.s32 4294967240, %v142_v55 }
   0xd   :  { %59 = vadd.xlane.f32.xlu0 %v58_v17  ;;  %v1330_v17 = vsub.s32 %v161_v61, %v144_v57 }
  0x10   :  { %86 = vadd.xlane.f32.xlu1 %v85_v22 }
  0x11   :  { %62 = vadd.xlane.f32.xlu0 %v61_v23 }
  0x14   :  { %89 = vadd.xlane.f32.xlu1 %v88_v28  ;;  %v1332_v28 = vsub.s32 %v168_v62, %v144_v57 }
  0x15   :  { %65 = vadd.xlane.f32.xlu0 %v64_v29 }
  0x18   :  { %92 = vadd.xlane.f32.xlu1 %v91_v34 }
  0x19   :  { %68 = vadd.xlane.f32.xlu0 %v67_v35 }
  0x1c   :  { %95 = vadd.xlane.f32.xlu1 %v94_v40  ;;  %v182_v40 = vadd.s32 4294967248, %v142_v55 }
  0x1d   :  { %71 = vadd.xlane.f32.xlu0 %v70_v41 }
  0x20   :  { %98 = vadd.xlane.f32.xlu1 %v97_v46 }
  0x21   :  { %74 = vadd.xlane.f32.xlu0 %v73_v47  ;;  %v1334_v47 = vsub.s32 %v175_v10, %v144_v57 }
  0x91   :  { %v78_v48 = vpop.xlane.xlu1 %77 }
  0x92   :  { %v54_v49 = vpop.xlane.xlu0 %53  ;;  %v108_v22 = vmul.f32 0.00390625, %v78_v48 }
  0x93   :  { %v100_v59 = vmul.f32 0.00390625, %v54_v49 }
  0x94   :  { %v199_v48 = vrot.slane %v108_v22, %v1324_v3 }
  0x95   :  { %v81_v50 = vpop.xlane.xlu1 %80 }
  0x96   :  { %v57_v51 = vpop.xlane.xlu0 %56  ;;  %v109_v23 = vmul.f32 0.00390625, %v81_v50 }
  0x97   :  { %v101_v29 = vmul.f32 0.00390625, %v57_v51 }
  0x98   :  { %v203_v50 = vrot.slane %v109_v23, %v1326_v11 }
  0x99   :  { %v84_v53 = vpop.xlane.xlu1 %83 }
  0x9a   :  { %v60_v54 = vpop.xlane.xlu0 %59  ;;  %v110_v34 = vmul.f32 0.00390625, %v84_v53  ;;  %v151_v53 = vrot.slane %v101_v29, %v1326_v11  ;;  %v204_v29 = vsel %vm152_vm0, %v203_v50, %v199_v48 }
  0x9b   :  { %v102_v41 = vmul.f32 0.00390625, %v60_v54 }
  0x9c   :  { %v208_v44 = vrot.slane %v110_v34, %v1328_v16 }
  0x9d   :  { %v87_v56 = vpop.xlane.xlu1 %86  ;;  %v158_v43 = vrot.slane %v102_v41, %v1328_v16 }
  0x9e   :  { %v63_v58 = vpop.xlane.xlu0 %62  ;;  %v111_v46 = vmul.f32 0.00390625, %v87_v56  ;;  %v1340_v56 = vsub.s32 %v182_v40, %v144_v57  ;;  %v1350_v40 = vsub.s32 %v189_v45, %v144_v57 }
  0x9f   :  { %v103_v60 = vmul.f32 0.00390625, %v63_v58 }
  0xa0   :  { %v213_v49 = vrot.slane %v111_v46, %v1330_v17  ;;  %v209_v46 = vsel %vm159_vm1, %v208_v44, %v204_v29 }
  0xa1   :  { %v90_v63 = vpop.xlane.xlu1 %89 }
  0xa2   :  { %v66_v7 = vpop.xlane.xlu0 %65  ;;  %v112_v61 = vmul.f32 0.00390625, %v90_v63  ;;  %v146_v63 = vrot.slane %v100_v59, %v1324_v3 }
  0xa3   :  { %v104_v62 = vmul.f32 0.00390625, %v66_v7  ;;  %v165_v7 = vrot.slane %v103_v60, %v1330_v17 }
  0xa4   :  { %v218_v22 = vrot.slane %v112_v61, %v1332_v28  ;;  %v153_v41 = vsel %vm152_vm0, %v151_v53, %v146_v63 }
  0xa5   :  { %v93_v35 = vpop.xlane.xlu1 %92  ;;  %v172_v34 = vrot.slane %v104_v62, %v1332_v28  ;;  %v160_v61 = vsel %vm159_vm1, %v158_v43, %v153_v41  ;;  %v116_v43 = vld [vmem:[%s1783_s1] sm:$0xf] }
  0xa6   :  { %v69_v52 = vpop.xlane.xlu0 %68  ;;  %v113_v51 = vmul.f32 0.00390625, %v93_v35  ;;  %v167_v45 = vsel %vm166_vm2, %v165_v7, %v160_v61  ;;  %v117_v61 = vld [vmem:[%s1784_s2] sm:$0xff] }
  0xa7   :  { %v105_v54 = vmul.f32 0.00390625, %v69_v52  ;;  %v174_v44 = vsel %vm173_vm3, %v172_v34, %v167_v45 }
  0xa8   :  { %v223_v35 = vrot.slane %v113_v51, %v1334_v47 }
  0xa9   :  { %v96_v10 = vpop.xlane.xlu1 %95  ;;  %v179_v52 = vrot.slane %v105_v54, %v1334_v47 }
  0xaa   :  { %v114_v58 = vmul.f32 0.00390625, %v96_v10  ;;  %v72_v55 = vpop.xlane.xlu0 %71  ;;  %v214_v10 = vsel %vm166_vm2, %v213_v49, %v209_v46 }
  0xab   :  { %v106_v23 = vmul.f32 0.00390625, %v72_v55  ;;  %v219_v57 = vsel %vm173_vm3, %v218_v22, %v214_v10  ;;  %v181_v49 = vsel %vm180_vm4, %v179_v52, %v174_v44 }
  0xac   :  { %v228_v59 = vrot.slane %v114_v58, %v1340_v56  ;;  %v224_v53 = vsel %vm180_vm4, %v223_v35, %v219_v57 }
  0xad   :  { %v99_v60 = vpop.xlane.xlu1 %98  ;;  %v186_v48 = vrot.slane %v106_v23, %v1340_v56 }
  0xae   :  { %v115_v50 = vmul.f32 0.00390625, %v99_v60  ;;  %v75_v62 = vpop.xlane.xlu0 %74  ;;  %v229_v55 = vsel %vm187_vm5, %v228_v59, %v224_v53  ;;  %v118_v59 = vld [vmem:[%s1784_s2 + $0x8] sm:$0xff]  ;;  %v119_v53 = vld [vmem:[%s1784_s2 + $0x10] sm:$0xff] }
  0xaf   :  { %v107_v51 = vmul.f32 0.00390625, %v75_v62  ;;  %v188_v7 = vsel %vm187_vm5, %v186_v48, %v181_v49 }
  0xb0   :  { %v233_v54 = vrot.slane %v115_v50, %v1350_v40 }
  0xb1   :  { %v193_v58 = vrot.slane %v107_v51, %v1350_v40 }
  0xb2   :  { %v234_v63 = vsel %vm194_vm6, %v233_v54, %v229_v55  ;;  %v120_v55 = vld [vmem:[%s1784_s2 + $0x18] sm:$0xff] }
  0xb3   :  { %v244_v22 = vmul.f32 %v234_v63, %v116_v43  ;;  %v195_v23 = vsel %vm194_vm6, %v193_v58, %v188_v7 }
  0xb4   :  { %v243_v29 = vmul.f32 %v195_v23, %v116_v43 }
  0xb5   :  { %v249_v34 = vsel %vm245_vm7, %v244_v22, 0.0 }
  0xb6   :  { %250 = vadd.xlane.f32.xlu1 %v249_v34  ;;  %v246_v35 = vsel %vm245_vm7, %v243_v29, 0.0  ;;  %v121_v29 = vld [vmem:[%s1784_s2 + $0x20] sm:$0xff] }
  0xb7   :  { %247 = vadd.xlane.f32.xlu0 %v246_v35 }
 0x143   :  { %v251_v41 = vpop.xlane.xlu1 %250 }
 0x144   :  { %v253_v46 = vmax.f32 %v251_v41, 0.0  ;;  %v248_v52 = vpop.xlane.xlu0 %247 }
 0x145   :  { %v252_v60 = vmax.f32 %v248_v52, 0.0  ;;  %v122_v52 = vld [vmem:[%s1784_s2 + $0x28] sm:$0xff] }
 0x146   :  { %v263_v10 = vrot.slane %v253_v46, %v1324_v3 }
 0x147   :  { %v259_v48 = vrot.slane %v252_v60, %v1324_v3 }
 0x148   :  { %v291_v51 = vmul.f32 %v263_v10, %v118_v59  ;;  %v290_v44 = vmul.f32 %v263_v10, %v117_v61  ;;  %v292_v49 = vmul.f32 %v263_v10, %v119_v53  ;;  %v293_v22 = vmul.f32 %v263_v10, %v120_v55 }
 0x149   :  { %v283_v50 = vmul.f32 %v259_v48, %v118_v59  ;;  %v282_v62 = vmul.f32 %v259_v48, %v117_v61  ;;  %v284_v58 = vmul.f32 %v259_v48, %v119_v53  ;;  %v285_v23 = vmul.f32 %v259_v48, %v120_v55  ;;  %v124_v53 = vld [vmem:[%s1784_s2 + $0x38] sm:$0xff] }
 0x14a   :  { %v326_v54 = vsel %vm298_vm8, %v291_v51, 0.0  ;;  %v323_v43 = vsel %vm298_vm8, %v290_v44, 0.0  ;;  %v329_v63 = vsel %vm298_vm8, %v292_v49, 0.0  ;;  %v332_v34 = vsel %vm298_vm8, %v293_v22, 0.0 }
 0x14b   :  { %v302_v45 = vsel %vm298_vm8, %v283_v50, 0.0  ;;  %v299_v57 = vsel %vm298_vm8, %v282_v62, 0.0  ;;  %v305_v7 = vsel %vm298_vm8, %v284_v58, 0.0  ;;  %v308_v35 = vsel %vm298_vm8, %v285_v23, 0.0  ;;  %v123_v62 = vld [vmem:[%s1784_s2 + $0x30] sm:$0xff] }
 0x14c   :  { %303 = vadd.xlane.f32.xlu1 %v302_v45  ;;  %300 = vadd.xlane.f32.xlu0 %v299_v57  ;;  %v294_v41 = vmul.f32 %v263_v10, %v121_v29  ;;  %v286_v46 = vmul.f32 %v259_v48, %v121_v29  ;;  %v295_v61 = vmul.f32 %v263_v10, %v122_v52 }
 0x14d   :  { %v287_v50 = vmul.f32 %v259_v48, %v122_v52  ;;  %v296_v51 = vmul.f32 %v263_v10, %v123_v62  ;;  %v288_v44 = vmul.f32 %v259_v48, %v123_v62  ;;  %v297_v49 = vmul.f32 %v263_v10, %v124_v53 }
 0x14e   :  { %v335_v60 = vsel %vm298_vm8, %v294_v41, 0.0  ;;  %v311_v59 = vsel %vm298_vm8, %v286_v46, 0.0  ;;  %v338_v45 = vsel %vm298_vm8, %v295_v61, 0.0  ;;  %v289_v58 = vmul.f32 %v259_v48, %v124_v53 }
 0x14f   :  { %v314_v57 = vsel %vm298_vm8, %v287_v50, 0.0  ;;  %v344_v55 = vsel %vm298_vm8, %v297_v49, 0.0 }
 0x150   :  { %327 = vadd.xlane.f32.xlu1 %v326_v54  ;;  %324 = vadd.xlane.f32.xlu0 %v323_v43  ;;  %v341_v54 = vsel %vm298_vm8, %v296_v51, 0.0  ;;  %v317_v43 = vsel %vm298_vm8, %v288_v44, 0.0 }
 0x154   :  { %330 = vadd.xlane.f32.xlu1 %v329_v63  ;;  %306 = vadd.xlane.f32.xlu0 %v305_v7  ;;  %v320_v63 = vsel %vm298_vm8, %v289_v58, 0.0 }
 0x158   :  { %333 = vadd.xlane.f32.xlu1 %v332_v34  ;;  %309 = vadd.xlane.f32.xlu0 %v308_v35 }
 0x15c   :  { %336 = vadd.xlane.f32.xlu1 %v335_v60  ;;  %312 = vadd.xlane.f32.xlu0 %v311_v59 }
 0x160   :  { %339 = vadd.xlane.f32.xlu1 %v338_v45  ;;  %315 = vadd.xlane.f32.xlu0 %v314_v57 }
 0x164   :  { %342 = vadd.xlane.f32.xlu1 %v341_v54  ;;  %318 = vadd.xlane.f32.xlu0 %v317_v43 }
 0x168   :  { %345 = vadd.xlane.f32.xlu1 %v344_v55  ;;  %321 = vadd.xlane.f32.xlu0 %v320_v63 }
 0x1d9   :  { %v304_v7 = vpop.xlane.xlu1 %303  ;;  %v301_v22 = vpop.xlane.xlu0 %300 }
 0x1da   :  { %v943_v23 = vmul.f32 -1.442695, %v304_v7  ;;  %v942_v29 = vmul.f32 -1.442695, %v301_v22 }
 0x1dc   :  { %974 = vpow2.f32 %v943_v23 }
 0x1dd   :  { %976 = vpow2.f32 %v942_v29  ;;  %v328_v34 = vpop.xlane.xlu1 %327  ;;  %v325_v35 = vpop.xlane.xlu0 %324 }
 0x1de   :  { %v951_v41 = vmul.f32 -1.442695, %v328_v34  ;;  %v950_v46 = vmul.f32 -1.442695, %v325_v35 }
 0x1e0   :  { %978 = vpow2.f32 %v951_v41 }
 0x1e1   :  { %980 = vpow2.f32 %v950_v46  ;;  %v331_v10 = vpop.xlane.xlu1 %330  ;;  %v307_v48 = vpop.xlane.xlu0 %306 }
 0x1e2   :  { %v952_v52 = vmul.f32 -1.442695, %v331_v10  ;;  %v944_v60 = vmul.f32 -1.442695, %v307_v48 }
 0x1e4   :  { %982 = vpow2.f32 %v952_v52 }
 0x1e5   :  { %984 = vpow2.f32 %v944_v60  ;;  %v334_v59 = vpop.xlane.xlu1 %333  ;;  %v310_v61 = vpop.xlane.xlu0 %309 }
 0x1e6   :  { %v975_v50 = vpop.eup %974  ;;  %v953_v62 = vmul.f32 -1.442695, %v334_v59  ;;  %v945_v51 = vmul.f32 -1.442695, %v310_v61 }
 0x1e7   :  { %v977_v45 = vpop.eup %976  ;;  %v396_v57 = vadd.f32 1.0, %v975_v50 }
 0x1e8   :  { %v395_v44 = vadd.f32 1.0, %v977_v45  ;;  %986 = vpow2.f32 %v953_v62 }
 0x1e9   :  { %988 = vrcp.f32 %v396_v57  ;;  %v337_v53 = vpop.xlane.xlu1 %336  ;;  %v313_v54 = vpop.xlane.xlu0 %312 }
 0x1ea   :  { %v979_v43 = vpop.eup %978  ;;  %990 = vrcp.f32 %v395_v44  ;;  %v954_v49 = vmul.f32 -1.442695, %v337_v53  ;;  %v946_v63 = vmul.f32 -1.442695, %v313_v54 }
 0x1eb   :  { %v981_v58 = vpop.eup %980  ;;  %v404_v55 = vadd.f32 1.0, %v979_v43  ;;  %992 = vpow2.f32 %v945_v51 }
 0x1ec   :  { %v403_v7 = vadd.f32 1.0, %v981_v58  ;;  %994 = vpow2.f32 %v954_v49 }
 0x1ed   :  { %996 = vrcp.f32 %v404_v55  ;;  %v340_v22 = vpop.xlane.xlu1 %339  ;;  %v316_v23 = vpop.xlane.xlu0 %315 }
 0x1ee   :  { %v983_v29 = vpop.eup %982  ;;  %998 = vrcp.f32 %v403_v7  ;;  %v955_v34 = vmul.f32 -1.442695, %v340_v22  ;;  %v947_v46 = vmul.f32 -1.442695, %v316_v23 }
 0x1ef   :  { %v985_v35 = vpop.eup %984  ;;  %v405_v41 = vadd.f32 1.0, %v983_v29  ;;  %1000 = vpow2.f32 %v946_v63 }
 0x1f0   :  { %v397_v10 = vadd.f32 1.0, %v985_v35  ;;  %1002 = vpow2.f32 %v955_v34 }
 0x1f1   :  { %1004 = vrcp.f32 %v405_v41  ;;  %v343_v48 = vpop.xlane.xlu1 %342  ;;  %v319_v52 = vpop.xlane.xlu0 %318 }
 0x1f2   :  { %v987_v60 = vpop.eup %986  ;;  %1006 = vrcp.f32 %v397_v10  ;;  %v956_v59 = vmul.f32 -1.442695, %v343_v48  ;;  %v948_v61 = vmul.f32 -1.442695, %v319_v52 }
 0x1f3   :  { %v989_v50 = vpop.eup %988  ;;  %v406_v62 = vadd.f32 1.0, %v987_v60  ;;  %1008 = vpow2.f32 %v947_v46 }
 0x1f4   :  { %v991_v45 = vpop.eup %990  ;;  %1010 = vpow2.f32 %v956_v59  ;;  %vm445_vm9 = vcmp.gt.f32.partialorder %v1169_v8, %v989_v50  ;;  %vm446_vm10 = vcmp.gt.f32.partialorder %v1174_v9, %v989_v50 }
 0x1f5   :  { %v993_v57 = vpop.eup %992  ;;  %1012 = vrcp.f32 %v406_v62  ;;  %v346_v51 = vpop.xlane.xlu1 %345  ;;  %v1420_v53 = vsel %vm445_vm9, %v1169_v8, 0.0  ;;  %v1423_v54 = vsel %vm446_vm10, %v1174_v9, 0.0  ;;  %vm443_vm11 = vcmp.gt.f32.partialorder %v1145_v2, %v991_v45 }
 0x1f6   :  { %v322_v44 = vpop.xlane.xlu0 %321  ;;  %v995_v43 = vpop.eup %994  ;;  %v398_v49 = vadd.f32 1.0, %v993_v57  ;;  %1014 = vpow2.f32 %v948_v61  ;;  %v957_v58 = vmul.f32 -1.442695, %v346_v51  ;;  %v510_v22 = vadd.f32 %v1423_v54, %v1420_v53 }
 0x1f7   :  { %v949_v55 = vmul.f32 -1.442695, %v322_v44  ;;  %v997_v63 = vpop.eup %996  ;;  %v407_v7 = vadd.f32 1.0, %v995_v43  ;;  %vm444_vm12 = vcmp.gt.f32.partialorder %v1152_v4, %v991_v45  ;;  %v1430_v8 = vsel %vm443_vm11, %v1145_v2, 0.0 }
 0x1f8   :  { %v999_v23 = vpop.eup %998  ;;  %1016 = vrcp.f32 %v398_v49  ;;  %v1433_v9 = vsel %vm444_vm12, %v1152_v4, 0.0  ;;  %vm461_vm13 = vcmp.gt.f32.partialorder %v1157_v5, %v997_v63  ;;  %vm462_vm14 = vcmp.gt.f32.partialorder %v1162_v6, %v997_v63  ;;  %511 = vadd.xlane.f32.xlu1 %v510_v22 }
 0x1f9   :  { %v1001_v29 = vpop.eup %1000  ;;  %1018 = vrcp.f32 %v407_v7  ;;  %v507_v34 = vadd.f32 %v1433_v9, %v1430_v8  ;;  %v1440_v35 = vsel %vm461_vm13, %v1157_v5, 0.0  ;;  %v1443_v2 = vsel %vm462_vm14, %v1162_v6, 0.0 }
 0x1fa   :  { %v1003_v41 = vpop.eup %1002  ;;  %v399_v46 = vadd.f32 1.0, %v1001_v29  ;;  %1020 = vpow2.f32 %v957_v58  ;;  %v534_v4 = vadd.f32 %v1443_v2, %v1440_v35  ;;  %vm459_vm15 = vcmp.gt.f32.partialorder %v1135_v0, %v999_v23 }
 0x1fb   :  { %v1005_v10 = vpop.eup %1004  ;;  %v408_v48 = vadd.f32 1.0, %v1003_v41  ;;  %1022 = vpow2.f32 %v949_v55  ;;  %508 = vadd.xlane.f32.xlu0 %v507_v34  ;;  %vm460_vm9 = vcmp.gt.f32.partialorder %v1140_v1, %v999_v23  ;;  %v1450_v5 = vsel %vm459_vm15, %v1135_v0, 0.0 }
 0x1fc   :  { %v1007_v52 = vpop.eup %1006  ;;  %1024 = vrcp.f32 %v399_v46  ;;  %v1453_v6 = vsel %vm460_vm9, %v1140_v1, 0.0  ;;  %vm463_vm10 = vcmp.gt.f32.partialorder %v1183_v12, %v1005_v10  ;;  %vm464_vm11 = vcmp.gt.f32.partialorder %v1188_v13, %v1005_v10  ;;  %535 = vadd.xlane.f32.xlu1 %v534_v4 }
 0x1fd   :  { %v1009_v60 = vpop.eup %1008  ;;  %1026 = vrcp.f32 %v408_v48  ;;  %v531_v59 = vadd.f32 %v1453_v6, %v1450_v5  ;;  %v1460_v61 = vsel %vm463_vm10, %v1183_v12, 0.0  ;;  %v1463_v0 = vsel %vm464_vm11, %v1188_v13, 0.0 }
 0x1fe   :  { %v1011_v50 = vpop.eup %1010  ;;  %v400_v62 = vadd.f32 1.0, %v1009_v60  ;;  %v537_v1 = vadd.f32 %v1463_v0, %v1460_v61  ;;  %vm447_vm12 = vcmp.gt.f32.partialorder %v1193_v14, %v1007_v52  ;;  %vm448_vm13 = vcmp.gt.f32.partialorder %v1198_v15, %v1007_v52 }
 0x1ff   :  { %v1013_v45 = vpop.eup %1012  ;;  %v409_v57 = vadd.f32 1.0, %v1011_v50  ;;  %532 = vadd.xlane.f32.xlu0 %v531_v59  ;;  %v1470_v51 = vsel %vm447_vm12, %v1193_v14, 0.0  ;;  %v1473_v12 = vsel %vm448_vm13, %v1198_v15, 0.0 }
 0x200   :  { %v1015_v13 = vpop.eup %1014  ;;  %1028 = vrcp.f32 %v400_v62  ;;  %v513_v44 = vadd.f32 %v1473_v12, %v1470_v51  ;;  %vm465_vm14 = vcmp.gt.f32.partialorder %v1207_v18, %v1013_v45  ;;  %vm466_vm15 = vcmp.gt.f32.partialorder %v1212_v19, %v1013_v45  ;;  %538 = vadd.xlane.f32.xlu1 %v537_v1 }
 0x201   :  { %1030 = vrcp.f32 %v409_v57  ;;  %v401_v43 = vadd.f32 1.0, %v1015_v13  ;;  %v1480_v49 = vsel %vm465_vm14, %v1207_v18, 0.0  ;;  %v1483_v14 = vsel %vm466_vm15, %v1212_v19, 0.0  ;;  %v1802_v57 = vld [vmem:[#allocation2_spill] sm:$0xff] }
 0x202   :  { %v1017_v15 = vpop.eup %1016  ;;  %v540_v58 = vadd.f32 %v1483_v14, %v1480_v49 }
 0x203   :  { %v1019_v55 = vpop.eup %1018  ;;  %1032 = vrcp.f32 %v401_v43  ;;  %514 = vadd.xlane.f32.xlu0 %v513_v44  ;;  %vm449_vm9 = vcmp.gt.f32.partialorder %v1217_v20, %v1017_v15  ;;  %vm450_vm10 = vcmp.gt.f32.partialorder %v1222_v21, %v1017_v15  ;;  %v1804_v44 = vld [vmem:[#allocation3_spill] sm:$0xff] }
 0x204   :  { %v1021_v63 = vpop.eup %1020  ;;  %v1490_v7 = vsel %vm449_vm9, %v1217_v20, 0.0  ;;  %v1493_v18 = vsel %vm450_vm10, %v1222_v21, 0.0  ;;  %vm467_vm11 = vcmp.gt.f32.partialorder %v1231_v24, %v1019_v55  ;;  %vm468_vm12 = vcmp.gt.f32.partialorder %v1236_v25, %v1019_v55  ;;  %541 = vadd.xlane.f32.xlu1 %v540_v58 }
 0x205   :  { %v1023_v19 = vpop.eup %1022  ;;  %v410_v22 = vadd.f32 1.0, %v1021_v63  ;;  %v516_v23 = vadd.f32 %v1493_v18, %v1490_v7  ;;  %v1500_v29 = vsel %vm467_vm11, %v1231_v24, 0.0  ;;  %v1503_v34 = vsel %vm468_vm12, %v1236_v25, 0.0 }
 0x206   :  { %v1025_v20 = vpop.eup %1024  ;;  %v402_v41 = vadd.f32 1.0, %v1023_v19  ;;  %v543_v21 = vadd.f32 %v1503_v34, %v1500_v29 }
 0x207   :  { %v1027_v46 = vpop.eup %1026  ;;  %1034 = vrcp.f32 %v410_v22  ;;  %517 = vadd.xlane.f32.xlu0 %v516_v23  ;;  %vm451_vm13 = vcmp.gt.f32.partialorder %v1241_v26, %v1025_v20  ;;  %vm452_vm14 = vcmp.gt.f32.partialorder %v1246_v27, %v1025_v20 }
 0x208   :  { %1036 = vrcp.f32 %v402_v41  ;;  %v1510_v4 = vsel %vm451_vm13, %v1241_v26, 0.0  ;;  %v1513_v24 = vsel %vm452_vm14, %v1246_v27, 0.0  ;;  %vm469_vm15 = vcmp.gt.f32.partialorder %v1255_v30, %v1027_v46  ;;  %544 = vadd.xlane.f32.xlu1 %v543_v21 }
 0x209   :  { %v519_v25 = vadd.f32 %v1513_v24, %v1510_v4  ;;  %vm470_vm9 = vcmp.gt.f32.partialorder %v1260_v31, %v1027_v46  ;;  %v1520_v10 = vsel %vm469_vm15, %v1255_v30, 0.0 }
 0x20a   :  { %v1029_v48 = vpop.eup %1028  ;;  %v1523_v52 = vsel %vm470_vm9, %v1260_v31, 0.0 }
 0x20b   :  { %v1031_v26 = vpop.eup %1030  ;;  %520 = vadd.xlane.f32.xlu0 %v519_v25  ;;  %v546_v27 = vadd.f32 %v1523_v52, %v1520_v10  ;;  %vm453_vm10 = vcmp.gt.f32.partialorder %v1265_v32, %v1029_v48  ;;  %vm454_vm11 = vcmp.gt.f32.partialorder %v1270_v33, %v1029_v48 }
 0x20c   :  { %v1530_v60 = vsel %vm453_vm10, %v1265_v32, 0.0  ;;  %v1533_v59 = vsel %vm454_vm11, %v1270_v33, 0.0  ;;  %vm471_vm12 = vcmp.gt.f32.partialorder %v1279_v36, %v1031_v26  ;;  %vm472_vm13 = vcmp.gt.f32.partialorder %v1284_v37, %v1031_v26 }
 0x20d   :  { %v1033_v30 = vpop.eup %1032  ;;  %547 = vadd.xlane.f32.xlu1 %v546_v27  ;;  %v522_v31 = vadd.f32 %v1533_v59, %v1530_v60  ;;  %v1540_v50 = vsel %vm471_vm12, %v1279_v36, 0.0  ;;  %v1543_v62 = vsel %vm472_vm13, %v1284_v37, 0.0 }
 0x20e   :  { %1800 = vst [vmem:[#allocation5_spill] sm:$0xff] %v1540_v50  ;;  %1801 = vst [vmem:[#allocation6_spill] sm:$0xff] %v1543_v62  ;;  %v549_v32 = vadd.f32 %v1543_v62, %v1540_v50  ;;  %vm455_vm14 = vcmp.gt.f32.partialorder %v1289_v38, %v1033_v30  ;;  %vm456_vm15 = vcmp.gt.f32.partialorder %v1294_v39, %v1033_v30 }
 0x20f   :  { %523 = vadd.xlane.f32.xlu0 %v522_v31  ;;  %v1550_v33 = vsel %vm455_vm14, %v1289_v38, 0.0  ;;  %v1553_v1 = vsel %vm456_vm15, %v1294_v39, 0.0  ;;  %v1805_v39 = vld [vmem:[#allocation4_spill] sm:$0xff] }
 0x210   :  { %v525_v36 = vadd.f32 %v1553_v1, %v1550_v33 }
 0x211   :  { %v1035_v45 = vpop.eup %1034  ;;  %550 = vadd.xlane.f32.xlu1 %v549_v32 }
 0x212   :  { %v1037_v37 = vpop.eup %1036  ;;  %vm473_vm9 = vcmp.gt.f32.partialorder %v1303_v42, %v1035_v45  ;;  %vm474_vm10 = vcmp.gt.f32.partialorder %v1802_v57, %v1035_v45 }
 0x213   :  { %526 = vadd.xlane.f32.xlu0 %v525_v36  ;;  %v1560_v13 = vsel %vm473_vm9, %v1303_v42, 0.0  ;;  %v1563_v38 = vsel %vm474_vm10, %v1802_v57, 0.0  ;;  %vm457_vm11 = vcmp.gt.f32.partialorder %v1804_v44, %v1037_v37  ;;  %vm458_vm12 = vcmp.gt.f32.partialorder %v1805_v39, %v1037_v37 }
 0x214   :  { %1803 = vst [vmem:[#allocation2_spill] sm:$0xff] %v1563_v38  ;;  %v552_v43 = vadd.f32 %v1563_v38, %v1560_v13  ;;  %v1570_v15 = vsel %vm457_vm11, %v1804_v44, 0.0  ;;  %v1573_v58 = vsel %vm458_vm12, %v1805_v39, 0.0 }
 0x215   :  { %v528_v42 = vadd.f32 %v1573_v58, %v1570_v15 }
 0x216   :  { %553 = vadd.xlane.f32.xlu1 %v552_v43 }
 0x217   :  { %529 = vadd.xlane.f32.xlu0 %v528_v42 }
 0x285   :  { %v512_v55 = vpop.xlane.xlu1 %511 }
 0x286   :  { %v556_v48 = vmul.f32 0.00390625, %v512_v55 }
 0x288   :  { %v509_v63 = vpop.xlane.xlu0 %508  ;;  %v603_v57 = vrot.slane %v556_v48, %v1326_v11 }
 0x289   :  { %v536_v19 = vpop.xlane.xlu1 %535  ;;  %v555_v31 = vmul.f32 0.00390625, %v509_v63 }
 0x28a   :  { %v564_v26 = vmul.f32 0.00390625, %v536_v19 }
 0x28b   :  { %v599_v55 = vrot.slane %v555_v31, %v1324_v3 }
 0x28c   :  { %v533_v22 = vpop.xlane.xlu0 %532  ;;  %v642_v43 = vrot.slane %v564_v26, %v1326_v11 }
 0x28d   :  { %v539_v23 = vpop.xlane.xlu1 %538  ;;  %v563_v27 = vmul.f32 0.00390625, %v533_v22 }
 0x28e   :  { %v565_v32 = vmul.f32 0.00390625, %v539_v23 }
 0x28f   :  { %v638_v42 = vrot.slane %v563_v27, %v1324_v3  ;;  %v604_v27 = vsel %vm152_vm0, %v603_v57, %v599_v55 }
 0x290   :  { %v515_v20 = vpop.xlane.xlu0 %514  ;;  %v647_v19 = vrot.slane %v565_v32, %v1328_v16 }
 0x291   :  { %v542_v41 = vpop.xlane.xlu1 %541  ;;  %v557_v36 = vmul.f32 0.00390625, %v515_v20 }
 0x292   :  { %v566_v45 = vmul.f32 0.00390625, %v542_v41 }
 0x293   :  { %v608_v23 = vrot.slane %v557_v36, %v1328_v16 }
 0x294   :  { %v518_v21 = vpop.xlane.xlu0 %517  ;;  %v652_v20 = vrot.slane %v566_v45, %v1330_v17 }
 0x295   :  { %v545_v46 = vpop.xlane.xlu1 %544  ;;  %v558_v44 = vmul.f32 0.00390625, %v518_v21 }
 0x296   :  { %v567_v39 = vmul.f32 0.00390625, %v545_v46 }
 0x297   :  { %v613_v21 = vrot.slane %v558_v44, %v1330_v17  ;;  %v609_v17 = vsel %vm159_vm1, %v608_v23, %v604_v27 }
 0x298   :  { %v521_v25 = vpop.xlane.xlu0 %520  ;;  %v657_v11 = vrot.slane %v567_v39, %v1332_v28  ;;  %v571_v39 = vld [vmem:[%s1785_s3] sm:$0xf] }
 0x299   :  { %v559_v62 = vmul.f32 0.00390625, %v521_v25  ;;  %v643_v25 = vsel %vm152_vm0, %v642_v43, %v638_v42 }
 0x29a   :  { %v548_v30 = vpop.xlane.xlu1 %547 }
 0x29b   :  { %v568_v50 = vmul.f32 0.00390625, %v548_v30  ;;  %v618_v48 = vrot.slane %v559_v62, %v1332_v28  ;;  %v614_v28 = vsel %vm166_vm2, %v613_v21, %v609_v17 }
 0x29c   :  { %v524_v37 = vpop.xlane.xlu0 %523 }
 0x29d   :  { %v560_v63 = vmul.f32 0.00390625, %v524_v37  ;;  %v662_v26 = vrot.slane %v568_v50, %v1334_v47  ;;  %v619_v57 = vsel %vm173_vm3, %v618_v48, %v614_v28  ;;  %v575_v48 = vld [vmem:[%s1786_s4 + $0x18] sm:$0xff] }
 0x29e   :  { %v551_v38 = vpop.xlane.xlu1 %550 }
 0x29f   :  { %v569_v22 = vmul.f32 0.00390625, %v551_v38  ;;  %v648_v38 = vsel %vm159_vm1, %v647_v19, %v643_v25  ;;  %v623_v16 = vrot.slane %v560_v63, %v1334_v47 }
 0x2a0   :  { %v527_v41 = vpop.xlane.xlu0 %526  ;;  %v653_v32 = vsel %vm166_vm2, %v652_v20, %v648_v38 }
 0x2a1   :  { %v561_v46 = vmul.f32 0.00390625, %v527_v41  ;;  %v667_v30 = vrot.slane %v569_v22, %v1340_v56  ;;  %v658_v50 = vsel %vm173_vm3, %v657_v11, %v653_v32  ;;  %v624_v43 = vsel %vm180_vm4, %v623_v16, %v619_v57 }
 0x2a2   :  { %v663_v47 = vsel %vm180_vm4, %v662_v26, %v658_v50  ;;  %v574_v26 = vld [vmem:[%s1786_s4 + $0x10] sm:$0xff] }
 0x2a3   :  { %v554_v31 = vpop.xlane.xlu1 %553  ;;  %v628_v36 = vrot.slane %v561_v46, %v1340_v56  ;;  %v668_v42 = vsel %vm187_vm5, %v667_v30, %v663_v47  ;;  %v572_v46 = vld [vmem:[%s1786_s4] sm:$0xff]  ;;  %v579_v47 = vld [vmem:[%s1786_s4 + $0x38] sm:$0xff] }
 0x2a4   :  { %v570_v45 = vmul.f32 0.00390625, %v554_v31  ;;  %v530_v37 = vpop.xlane.xlu0 %529 }
 0x2a5   :  { %v562_v62 = vmul.f32 0.00390625, %v530_v37  ;;  %v629_v19 = vsel %vm187_vm5, %v628_v36, %v624_v43  ;;  %v577_v36 = vld [vmem:[%s1786_s4 + $0x28] sm:$0xff] }
 0x2a6   :  { %v672_v44 = vrot.slane %v570_v45, %v1350_v40  ;;  %v576_v45 = vld [vmem:[%s1786_s4 + $0x20] sm:$0xff] }
 0x2a7   :  { %v633_v56 = vrot.slane %v562_v62, %v1350_v40  ;;  %v573_v40 = vld [vmem:[%s1786_s4 + $0x8] sm:$0xff] }
 0x2a8   :  { %v673_v55 = vsel %vm194_vm6, %v672_v44, %v668_v42  ;;  %v578_v44 = vld [vmem:[%s1786_s4 + $0x30] sm:$0xff] }
 0x2a9   :  { %v681_v63 = vmul.f32 %v673_v55, %v571_v39  ;;  %v634_v22 = vsel %vm194_vm6, %v633_v56, %v629_v19 }
 0x2aa   :  { %v680_v23 = vmul.f32 %v634_v22, %v571_v39 }
 0x2ab   :  { %v685_v20 = vsel %vm245_vm7, %v681_v63, 0.0 }
 0x2ac   :  { %686 = vadd.xlane.f32.xlu1 %v685_v20  ;;  %v682_v41 = vsel %vm245_vm7, %v680_v23, 0.0 }
 0x2ad   :  { %683 = vadd.xlane.f32.xlu0 %v682_v41 }
 0x339   :  { %v687_v16 = vpop.xlane.xlu1 %686 }
 0x33a   :  { %v684_v21 = vpop.xlane.xlu0 %683  ;;  %v689_v37 = vmax.f32 %v687_v16, 0.0 }
 0x33b   :  { %v688_v11 = vmax.f32 %v684_v21, 0.0 }
 0x33c   :  { %v699_v39 = vrot.slane %v689_v37, %v1324_v3 }
 0x33d   :  { %v695_v25 = vrot.slane %v688_v11, %v1324_v3 }
 0x33e   :  { %v723_v22 = vmul.f32 %v699_v39, %v573_v40  ;;  %v722_v23 = vmul.f32 %v699_v39, %v572_v46  ;;  %v725_v41 = vmul.f32 %v699_v39, %v575_v48  ;;  %v724_v21 = vmul.f32 %v699_v39, %v574_v26 }
 0x33f   :  { %v715_v27 = vmul.f32 %v695_v25, %v573_v40  ;;  %v714_v38 = vmul.f32 %v695_v25, %v572_v46  ;;  %v717_v17 = vmul.f32 %v695_v25, %v575_v48  ;;  %v716_v32 = vmul.f32 %v695_v25, %v574_v26 }
 0x340   :  { %v719_v62 = vmul.f32 %v695_v25, %v577_v36  ;;  %v718_v57 = vmul.f32 %v695_v25, %v576_v45  ;;  %v721_v42 = vmul.f32 %v695_v25, %v579_v47  ;;  %v720_v55 = vmul.f32 %v695_v25, %v578_v44 }
 0x341   :  { %v733_v30 = vsel %vm298_vm8, %v715_v27, 0.0  ;;  %v730_v31 = vsel %vm298_vm8, %v714_v38, 0.0  ;;  %v739_v28 = vsel %vm298_vm8, %v717_v17, 0.0  ;;  %v736_v50 = vsel %vm298_vm8, %v716_v32, 0.0 }
 0x342   :  { %734 = vadd.xlane.f32.xlu1 %v733_v30  ;;  %731 = vadd.xlane.f32.xlu0 %v730_v31  ;;  %v745_v43 = vsel %vm298_vm8, %v719_v62, 0.0  ;;  %v742_v56 = vsel %vm298_vm8, %v718_v57, 0.0  ;;  %v751_v19 = vsel %vm298_vm8, %v721_v42, 0.0  ;;  %v748_v63 = vsel %vm298_vm8, %v720_v55, 0.0 }
 0x343   :  { %v757_v20 = vsel %vm298_vm8, %v723_v22, 0.0  ;;  %v754_v3 = vsel %vm298_vm8, %v722_v23, 0.0  ;;  %v763_v11 = vsel %vm298_vm8, %v725_v41, 0.0  ;;  %v760_v25 = vsel %vm298_vm8, %v724_v21, 0.0 }
 0x344   :  { %v727_v27 = vmul.f32 %v699_v39, %v577_v36  ;;  %v726_v38 = vmul.f32 %v699_v39, %v576_v45  ;;  %v729_v16 = vmul.f32 %v699_v39, %v579_v47  ;;  %v728_v30 = vmul.f32 %v699_v39, %v578_v44 }
 0x346   :  { %740 = vadd.xlane.f32.xlu1 %v739_v28  ;;  %737 = vadd.xlane.f32.xlu0 %v736_v50  ;;  %v769_v40 = vsel %vm298_vm8, %v727_v27, 0.0  ;;  %v766_v46 = vsel %vm298_vm8, %v726_v38, 0.0  ;;  %v775_v48 = vsel %vm298_vm8, %v729_v16, 0.0  ;;  %v772_v26 = vsel %vm298_vm8, %v728_v30, 0.0 }
 0x34a   :  { %746 = vadd.xlane.f32.xlu1 %v745_v43  ;;  %743 = vadd.xlane.f32.xlu0 %v742_v56 }
 0x34e   :  { %752 = vadd.xlane.f32.xlu1 %v751_v19  ;;  %749 = vadd.xlane.f32.xlu0 %v748_v63 }
 0x352   :  { %758 = vadd.xlane.f32.xlu1 %v757_v20  ;;  %755 = vadd.xlane.f32.xlu0 %v754_v3 }
 0x356   :  { %764 = vadd.xlane.f32.xlu1 %v763_v11  ;;  %761 = vadd.xlane.f32.xlu0 %v760_v25 }
 0x35a   :  { %770 = vadd.xlane.f32.xlu1 %v769_v40  ;;  %767 = vadd.xlane.f32.xlu0 %v766_v46 }
 0x35e   :  { %776 = vadd.xlane.f32.xlu1 %v775_v48  ;;  %773 = vadd.xlane.f32.xlu0 %v772_v26 }
 0x3cf   :  { %v735_v31 = vpop.xlane.xlu1 %734  ;;  %v732_v17 = vpop.xlane.xlu0 %731 }
 0x3d0   :  { %v959_v32 = vmul.f32 -1.442695, %v735_v31  ;;  %v958_v36 = vmul.f32 -1.442695, %v732_v17 }
 0x3d2   :  { %1038 = vpow2.f32 %v959_v32 }
 0x3d3   :  { %1040 = vpow2.f32 %v958_v36  ;;  %v741_v45 = vpop.xlane.xlu1 %740  ;;  %v738_v37 = vpop.xlane.xlu0 %737 }
 0x3d4   :  { %v961_v28 = vmul.f32 -1.442695, %v741_v45  ;;  %v960_v50 = vmul.f32 -1.442695, %v738_v37 }
 0x3d6   :  { %1042 = vpow2.f32 %v961_v28 }
 0x3d7   :  { %1044 = vpow2.f32 %v960_v50  ;;  %v747_v62 = vpop.xlane.xlu1 %746  ;;  %v744_v57 = vpop.xlane.xlu0 %743 }
 0x3d8   :  { %v963_v47 = vmul.f32 -1.442695, %v747_v62  ;;  %v962_v44 = vmul.f32 -1.442695, %v744_v57 }
 0x3da   :  { %1046 = vpow2.f32 %v963_v47 }
 0x3db   :  { %1048 = vpow2.f32 %v962_v44  ;;  %v753_v39 = vpop.xlane.xlu1 %752  ;;  %v750_v43 = vpop.xlane.xlu0 %749 }
 0x3dc   :  { %v1039_v56 = vpop.eup %1038  ;;  %v965_v42 = vmul.f32 -1.442695, %v753_v39  ;;  %v964_v63 = vmul.f32 -1.442695, %v750_v43 }
 0x3dd   :  { %v1041_v55 = vpop.eup %1040  ;;  %v827_v19 = vadd.f32 1.0, %v1039_v56 }
 0x3de   :  { %v826_v22 = vadd.f32 1.0, %v1041_v55  ;;  %1050 = vpow2.f32 %v965_v42 }
 0x3df   :  { %1052 = vrcp.f32 %v827_v19  ;;  %v759_v23 = vpop.xlane.xlu1 %758  ;;  %v756_v20 = vpop.xlane.xlu0 %755 }
 0x3e0   :  { %v1043_v3 = vpop.eup %1042  ;;  %1054 = vrcp.f32 %v826_v22  ;;  %v967_v41 = vmul.f32 -1.442695, %v759_v23  ;;  %v966_v25 = vmul.f32 -1.442695, %v756_v20 }
 0x3e1   :  { %v1045_v21 = vpop.eup %1044  ;;  %v829_v11 = vadd.f32 1.0, %v1043_v3  ;;  %1056 = vpow2.f32 %v964_v63 }
 0x3e2   :  { %v828_v27 = vadd.f32 1.0, %v1045_v21  ;;  %1058 = vpow2.f32 %v967_v41 }
 0x3e3   :  { %1060 = vrcp.f32 %v829_v11  ;;  %v765_v38 = vpop.xlane.xlu1 %764  ;;  %v762_v40 = vpop.xlane.xlu0 %761 }
 0x3e4   :  { %v1047_v46 = vpop.eup %1046  ;;  %1062 = vrcp.f32 %v828_v27  ;;  %v969_v16 = vmul.f32 -1.442695, %v765_v38  ;;  %v968_v26 = vmul.f32 -1.442695, %v762_v40 }
 0x3e5   :  { %v1049_v30 = vpop.eup %1048  ;;  %v831_v48 = vadd.f32 1.0, %v1047_v46  ;;  %1064 = vpow2.f32 %v966_v25 }
 0x3e6   :  { %v830_v31 = vadd.f32 1.0, %v1049_v30  ;;  %1066 = vpow2.f32 %v969_v16 }
 0x3e7   :  { %1068 = vrcp.f32 %v831_v48  ;;  %v771_v17 = vpop.xlane.xlu1 %770  ;;  %v768_v32 = vpop.xlane.xlu0 %767 }
 0x3e8   :  { %v1051_v36 = vpop.eup %1050  ;;  %1070 = vrcp.f32 %v830_v31  ;;  %v971_v45 = vmul.f32 -1.442695, %v771_v17  ;;  %v970_v37 = vmul.f32 -1.442695, %v768_v32 }
 0x3e9   :  { %v1053_v28 = vpop.eup %1052  ;;  %v833_v50 = vadd.f32 1.0, %v1051_v36  ;;  %1072 = vpow2.f32 %v968_v26 }
 0x3ea   :  { %v1055_v62 = vpop.eup %1054  ;;  %v876_v57 = vmul.f32 %v1053_v28, %v1420_v53  ;;  %v877_v47 = vmul.f32 %v1053_v28, %v1423_v54  ;;  %1074 = vpow2.f32 %v971_v45 }
 0x3eb   :  { %v1057_v44 = vpop.eup %1056  ;;  %v874_v39 = vmul.f32 %v1055_v62, %v1430_v8  ;;  %v875_v43 = vmul.f32 %v1055_v62, %v1433_v9  ;;  %1076 = vrcp.f32 %v833_v50  ;;  %v777_v56 = vpop.xlane.xlu1 %776 }
 0x3ec   :  { %v774_v42 = vpop.xlane.xlu0 %773  ;;  %v1059_v55 = vpop.eup %1058  ;;  %908 = vst [vmem:[%s1787_s5 + $0x10] sm:$0xff] %v876_v57  ;;  %909 = vst [vmem:[%s1787_s5 + $0x18] sm:$0xff] %v877_v47  ;;  %v832_v53 = vadd.f32 1.0, %v1057_v44  ;;  %1078 = vpow2.f32 %v970_v37  ;;  %v973_v54 = vmul.f32 -1.442695, %v777_v56 }
 0x3ed   :  { %v1061_v19 = vpop.eup %1060  ;;  %906 = vst [vmem:[%s1787_s5] sm:$0xff] %v874_v39  ;;  %907 = vst [vmem:[%s1787_s5 + $0x8] sm:$0xff] %v875_v43  ;;  %v835_v8 = vadd.f32 1.0, %v1059_v55  ;;  %v972_v9 = vmul.f32 -1.442695, %v774_v42  ;;  %v1806_v43 = vld [vmem:[#allocation2_spill] sm:$0xff]  ;;  %v1807_v42 = vld [vmem:[#allocation5_spill] sm:$0xff] }
 0x3ee   :  { %v1063_v63 = vpop.eup %1062  ;;  %v880_v22 = vmul.f32 %v1061_v19, %v1490_v7  ;;  %v881_v23 = vmul.f32 %v1061_v19, %v1493_v18  ;;  %1080 = vrcp.f32 %v832_v53  ;;  %v1808_v53 = vld [vmem:[#allocation6_spill] sm:$0xff] }
 0x3ef   :  { %v1065_v20 = vpop.eup %1064  ;;  %v878_v3 = vmul.f32 %v1063_v63, %v1470_v51  ;;  %v879_v41 = vmul.f32 %v1063_v63, %v1473_v12  ;;  %1082 = vrcp.f32 %v835_v8 }
 0x3f0   :  { %v1067_v21 = vpop.eup %1066  ;;  %912 = vst [vmem:[%s1787_s5 + $0x30] sm:$0xff] %v880_v22  ;;  %913 = vst [vmem:[%s1787_s5 + $0x38] sm:$0xff] %v881_v23  ;;  %v834_v11 = vadd.f32 1.0, %v1065_v20  ;;  %1084 = vpow2.f32 %v973_v54 }
 0x3f1   :  { %v1069_v7 = vpop.eup %1068  ;;  %910 = vst [vmem:[%s1787_s5 + $0x20] sm:$0xff] %v878_v3  ;;  %911 = vst [vmem:[%s1787_s5 + $0x28] sm:$0xff] %v879_v41  ;;  %v837_v51 = vadd.f32 1.0, %v1067_v21  ;;  %1086 = vpow2.f32 %v972_v9 }
 0x3f2   :  { %v1071_v12 = vpop.eup %1070  ;;  %v884_v18 = vmul.f32 %v1069_v7, %v1530_v60  ;;  %v885_v25 = vmul.f32 %v1069_v7, %v1533_v59  ;;  %1088 = vrcp.f32 %v834_v11 }
 0x3f3   :  { %v1073_v27 = vpop.eup %1072  ;;  %v882_v38 = vmul.f32 %v1071_v12, %v1510_v4  ;;  %v883_v40 = vmul.f32 %v1071_v12, %v1513_v24  ;;  %1090 = vrcp.f32 %v837_v51 }
 0x3f4   :  { %v1075_v46 = vpop.eup %1074  ;;  %916 = vst [vmem:[%s1787_s5 + $0x50] sm:$0xff] %v884_v18  ;;  %917 = vst [vmem:[%s1787_s5 + $0x58] sm:$0xff] %v885_v25  ;;  %v836_v16 = vadd.f32 1.0, %v1073_v27 }
 0x3f5   :  { %v1077_v60 = vpop.eup %1076  ;;  %914 = vst [vmem:[%s1787_s5 + $0x40] sm:$0xff] %v882_v38  ;;  %915 = vst [vmem:[%s1787_s5 + $0x48] sm:$0xff] %v883_v40  ;;  %v839_v4 = vadd.f32 1.0, %v1075_v46 }
 0x3f6   :  { %v1079_v24 = vpop.eup %1078  ;;  %v888_v59 = vmul.f32 %v1077_v60, %v1570_v15  ;;  %v889_v30 = vmul.f32 %v1077_v60, %v1573_v58  ;;  %1092 = vrcp.f32 %v836_v16 }
 0x3f7   :  { %1094 = vrcp.f32 %v839_v4  ;;  %v838_v48 = vadd.f32 1.0, %v1079_v24 }
 0x3f8   :  { %v1081_v26 = vpop.eup %1080  ;;  %920 = vst [vmem:[%s1787_s5 + $0x70] sm:$0xff] %v888_v59  ;;  %921 = vst [vmem:[%s1787_s5 + $0x78] sm:$0xff] %v889_v30 }
 0x3f9   :  { %v1083_v31 = vpop.eup %1082  ;;  %v886_v17 = vmul.f32 %v1081_v26, %v1550_v33  ;;  %v887_v32 = vmul.f32 %v1081_v26, %v1553_v1  ;;  %1096 = vrcp.f32 %v838_v48 }
 0x3fa   :  { %v1085_v15 = vpop.eup %1084  ;;  %v892_v58 = vmul.f32 %v1083_v31, %v1440_v35  ;;  %v893_v36 = vmul.f32 %v1083_v31, %v1443_v2 }
 0x3fb   :  { %v1087_v45 = vpop.eup %1086  ;;  %918 = vst [vmem:[%s1787_s5 + $0x60] sm:$0xff] %v886_v17  ;;  %919 = vst [vmem:[%s1787_s5 + $0x68] sm:$0xff] %v887_v32  ;;  %v841_v37 = vadd.f32 1.0, %v1085_v15 }
 0x3fc   :  { %v1089_v28 = vpop.eup %1088  ;;  %924 = vst [vmem:[%s1787_s5 + $0x90] sm:$0xff] %v892_v58  ;;  %925 = vst [vmem:[%s1787_s5 + $0x98] sm:$0xff] %v893_v36  ;;  %v840_v35 = vadd.f32 1.0, %v1087_v45 }
 0x3fd   :  { %v1091_v2 = vpop.eup %1090  ;;  %v890_v33 = vmul.f32 %v1089_v28, %v1450_v5  ;;  %v891_v1 = vmul.f32 %v1089_v28, %v1453_v6  ;;  %1098 = vrcp.f32 %v841_v37 }
 0x3fe   :  { %v896_v50 = vmul.f32 %v1091_v2, %v1480_v49  ;;  %v897_v62 = vmul.f32 %v1091_v2, %v1483_v14  ;;  %1100 = vrcp.f32 %v840_v35 }
 0x3ff   :  { %922 = vst [vmem:[%s1787_s5 + $0x80] sm:$0xff] %v890_v33  ;;  %923 = vst [vmem:[%s1787_s5 + $0x88] sm:$0xff] %v891_v1 }
 0x400   :  { %v1093_v57 = vpop.eup %1092  ;;  %928 = vst [vmem:[%s1787_s5 + $0xb0] sm:$0xff] %v896_v50  ;;  %929 = vst [vmem:[%s1787_s5 + $0xb8] sm:$0xff] %v897_v62 }
 0x401   :  { %v1095_v5 = vpop.eup %1094  ;;  %v894_v6 = vmul.f32 %v1093_v57, %v1460_v61  ;;  %v895_v49 = vmul.f32 %v1093_v57, %v1463_v0 }
 0x402   :  { %v900_v14 = vmul.f32 %v1095_v5, %v1520_v10  ;;  %v901_v47 = vmul.f32 %v1095_v5, %v1523_v52 }
 0x403   :  { %v1097_v44 = vpop.eup %1096  ;;  %926 = vst [vmem:[%s1787_s5 + $0xa0] sm:$0xff] %v894_v6  ;;  %927 = vst [vmem:[%s1787_s5 + $0xa8] sm:$0xff] %v895_v49 }
 0x404   :  { %932 = vst [vmem:[%s1787_s5 + $0xd0] sm:$0xff] %v900_v14  ;;  %933 = vst [vmem:[%s1787_s5 + $0xd8] sm:$0xff] %v901_v47  ;;  %v898_v61 = vmul.f32 %v1097_v44, %v1500_v29  ;;  %v899_v0 = vmul.f32 %v1097_v44, %v1503_v34 }
 0x406   :  { %930 = vst [vmem:[%s1787_s5 + $0xc0] sm:$0xff] %v898_v61  ;;  %931 = vst [vmem:[%s1787_s5 + $0xc8] sm:$0xff] %v899_v0 }
 0x407   :  { %v1099_v10 = vpop.eup %1098 }
 0x408   :  { %v1101_v52 = vpop.eup %1100  ;;  %v904_v39 = vmul.f32 %v1099_v10, %v1560_v13  ;;  %v905_v56 = vmul.f32 %v1099_v10, %v1806_v43 }
 0x409   :  { %v902_v55 = vmul.f32 %v1101_v52, %v1807_v42  ;;  %v903_v29 = vmul.f32 %v1101_v52, %v1808_v53 }
 0x40a   :  { %936 = vst [vmem:[%s1787_s5 + $0xf0] sm:$0xff] %v904_v39  ;;  %937 = vst [vmem:[%s1787_s5 + $0xf8] sm:$0xff] %v905_v56 }
 0x40b   :  { %934 = vst [vmem:[%s1787_s5 + $0xe0] sm:$0xff] %v902_v55  ;;  %935 = vst [vmem:[%s1787_s5 + $0xe8] sm:$0xff] %v903_v29 }

</bundles_post_ra>
